<compile_context>
chip_gen: v7x
topology: tpu7x:2x2x1
jax: 0.10.0
libtpu: 0.0.40
codegen_flags: <defaults>
</compile_context>

<pallas_src>
import jax
import jax.numpy as jnp
from jax.experimental import pallas as pl
from jax.experimental.pallas import tpu as pltpu

_LANE = 128
_SUBLANE_IO = 16          # bf16 activations pack 16 rows per vreg sublane group
_MAX_TILE_B = 1024        # batch tile cap (sweepable); multiple of 16


def _round_up(x, m):
    return ((x + m - 1) // m) * m


def _cdiv(a, b):
    return (a + b - 1) // b


def _hardswish(x):
    return x * jnp.clip(x + 3.0, 0.0, 6.0) * (1.0 / 6.0)


def _actor_sac_kernel(x_ref, w1_ref, w2_ref, w3_ref, w4_ref,
                      b1_ref, b2_ref, b3_ref, b4_ref, out_ref):
    """Fused net_state (Linear/ReLU/Linear/Hswish/Linear/Hswish) + tanh(net_a_avg)."""
    x = x_ref[...]                                                    # bf16 tile

    h = jnp.dot(x, w1_ref[...], preferred_element_type=jnp.float32) + b1_ref[...]
    h = jnp.maximum(h, 0.0)                                           # ReLU (f32)

    h = jnp.dot(h.astype(jnp.bfloat16), w2_ref[...],
                preferred_element_type=jnp.float32) + b2_ref[...]
    h = _hardswish(h)                                                 # f32 epilogue

    h = jnp.dot(h.astype(jnp.bfloat16), w3_ref[...],
                preferred_element_type=jnp.float32) + b3_ref[...]
    h = _hardswish(h)

    a = jnp.dot(h.astype(jnp.bfloat16), w4_ref[...],
                preferred_element_type=jnp.float32) + b4_ref[...]
    out_ref[...] = jnp.tanh(a).astype(out_ref.dtype)                  # lane-dense bf16 store


def pack_actor_sac_params(params, state_dim, mid_dim, action_dim):
    """Per-layer zero padding: exact math, no wasted K/N on layers 1 and 4."""
    S_p = _round_up(state_dim, _LANE)
    M_p = _round_up(mid_dim, _LANE)
    A_p = _round_up(action_dim, _LANE)

    def pad_w(w, rows, cols):
        return jnp.pad(w.astype(jnp.float32),
                       ((0, rows - w.shape[0]), (0, cols - w.shape[1]))
                       ).astype(jnp.bfloat16)

    def pad_b(b, cols):
        return jnp.pad(b.astype(jnp.float32), ((0, cols - b.shape[0]),)).reshape(1, cols)

    return {
        "w1": pad_w(params["w1"], S_p, M_p), "b1": pad_b(params["b1"], M_p),
        "w2": pad_w(params["w2"], M_p, M_p), "b2": pad_b(params["b2"], M_p),
        "w3": pad_w(params["w3"], M_p, M_p), "b3": pad_b(params["b3"], M_p),
        "w4": pad_w(params["w4"], M_p, A_p), "b4": pad_b(params["b4"], A_p),
        "state_dim": state_dim, "action_dim": action_dim,
        "S_p": S_p, "M_p": M_p, "A_p": A_p,
    }


def actor_sac_forward(state, packed, *, slice_lanes=True):
    """Pallas wrapper: returns tanh(net_a_avg(net_state(state))) like ActorSAC.forward.

    Output is bf16 (tanh head of an RL policy). Pass slice_lanes=False to receive
    the lane-dense (B, A_p) slab and skip the column-slice HBM pass downstream.
    """
    B = state.shape[0]
    S_p, M_p, A_p = packed["S_p"], packed["M_p"], packed["A_p"]
    state_dim, action_dim = packed["state_dim"], packed["action_dim"]

    # Batch tiling: >=2 grid steps when the batch allows (v7x has 2 TCs), even
    # step count for balance, tiles multiple of 16 (bf16), minimal row padding.
    b_pad = _round_up(max(B, 1), _SUBLANE_IO)
    num_steps = max(2, _cdiv(b_pad, _MAX_TILE_B))
    num_steps = 2 * _cdiv(num_steps, 2)                      # prefer an even split
    tile_b = max(_SUBLANE_IO, _round_up(_cdiv(b_pad, num_steps), _SUBLANE_IO))
    tile_b = min(tile_b, _round_up(_MAX_TILE_B, _SUBLANE_IO))
    b_pad = _round_up(b_pad, tile_b)
    grid_b = b_pad // tile_b

    # Single fused cast+pad into a bf16, lane-dense input slab.
    x = jnp.pad(state.astype(jnp.bfloat16),
                ((0, b_pad - B), (0, S_p - state_dim)))

    w1, w2, w3, w4 = packed["w1"], packed["w2"], packed["w3"], packed["w4"]
    b1, b2, b3, b4 = packed["b1"], packed["b2"], packed["b3"], packed["b4"]

    # VMEM budget: double-buffered act tiles + (double-buffered) weights + headroom.
    w_bytes = 2 * (S_p * M_p + 2 * M_p * M_p + M_p * A_p)            # bf16 weights
    b_bytes = 4 * (3 * M_p + A_p)                                    # f32 biases
    act_bytes = 2 * tile_b * (S_p + A_p) * 2                         # 2x-buffered bf16 I/O
    interm_bytes = 2 * tile_b * M_p * 4                              # f32 hidden headroom
    vmem_needed = 2 * (w_bytes + b_bytes) + act_bytes + interm_bytes + (4 << 20)
    vmem_limit = int(min(max(vmem_needed, 32 << 20), 60 << 20))      # safe on v5e..v7x

    flops = 2 * b_pad * (S_p * M_p + 2 * M_p * M_p + M_p * A_p)
    cost = pl.CostEstimate(
        flops=int(flops),
        transcendentals=int(b_pad * A_p),                            # final tanh
        bytes_accessed=int(b_pad * S_p * 2 + w_bytes + b_bytes + b_pad * A_p * 2),
    )

    inv = lambda i: (0, 0)                                           # grid-invariant

    out = pl.pallas_call(
        _actor_sac_kernel,
        out_shape=jax.ShapeDtypeStruct((b_pad, A_p), jnp.bfloat16),
        grid=(grid_b,),
        in_specs=[
            pl.BlockSpec((tile_b, S_p), lambda i: (i, 0)),   # activations: batch-tiled bf16
            pl.BlockSpec((S_p, M_p), inv),                   # W1  (grid-invariant)
            pl.BlockSpec((M_p, M_p), inv),                   # W2
            pl.BlockSpec((M_p, M_p), inv),                   # W3
            pl.BlockSpec((M_p, A_p), inv),                   # W4
            pl.BlockSpec((1, M_p), inv),                     # b1 (f32)
            pl.BlockSpec((1, M_p), inv),                     # b2
            pl.BlockSpec((1, M_p), inv),                     # b3
            pl.BlockSpec((1, A_p), inv),                     # b4
        ],
        out_specs=pl.BlockSpec((tile_b, A_p), lambda i: (i, 0)),
        compiler_params=pltpu.CompilerParams(
            dimension_semantics=("parallel",),
            vmem_limit_bytes=vmem_limit),
        cost_estimate=cost,
    )(x, w1, w2, w3, w4, b1, b2, b3, b4)

    if slice_lanes:
        return out[:B, :action_dim]
    return out[:B]                                           # rows only; keep lane-dense slab


def _orthogonal(key, shape, gain=1.0):
    """Deterministic orthogonal-ish init (QR of a gaussian), like nn.init.orthogonal_."""
    rows, cols = shape
    n = max(rows, cols)
    a = jax.random.normal(key, (n, n), dtype=jnp.float32)
    q, r = jnp.linalg.qr(a)
    q = q * jnp.sign(jnp.diag(r))
    return gain * q[:rows, :cols]


def init_actor_sac_params(key, state_dim, mid_dim, action_dim):
    """Weights stored [in, out] (transposed vs. torch); biases [out]."""
    k1, k2, k3, k4 = jax.random.split(key, 4)
    return {
        "w1": _orthogonal(k1, (state_dim, mid_dim), 1.0),
        "b1": jnp.zeros((mid_dim,), jnp.float32),
        "w2": _orthogonal(k2, (mid_dim, mid_dim), 1.0),
        "b2": jnp.zeros((mid_dim,), jnp.float32),
        "w3": _orthogonal(k3, (mid_dim, mid_dim), 1.0),
        "b3": jnp.zeros((mid_dim,), jnp.float32),
        # net_a_avg: layer_norm(std=0.01, bias_const=1e-6) per the PyTorch spec
        "w4": _orthogonal(k4, (mid_dim, action_dim), 0.01),
        "b4": jnp.full((action_dim,), 1e-6, jnp.float32),
    }


def actor_sac_forward_ref(state, params):
    """Pure-JAX reference with the same bf16-matmul / f32-accumulate numerics."""
    def linear(x, w, b):
        return jnp.dot(x.astype(jnp.bfloat16), w.astype(jnp.bfloat16),
                       preferred_element_type=jnp.float32) + b
    h = jnp.maximum(linear(state, params["w1"], params["b1"]), 0.0)
    h = _hardswish(linear(h, params["w2"], params["b2"]))
    h = _hardswish(linear(h, params["w3"], params["b3"]))
    return jnp.tanh(linear(h, params["w4"], params["b4"]))


if __name__ == "__main__":
    batch, state_dim, mid_dim, action_dim = 4, 16, 32, 6

    key = jax.random.PRNGKey(0)
    k_params, k_state = jax.random.split(key)

    params = init_actor_sac_params(k_params, state_dim, mid_dim, action_dim)
    packed = pack_actor_sac_params(params, state_dim, mid_dim, action_dim)
    state = jax.random.normal(k_state, (batch, state_dim), dtype=jnp.float32)

    action = actor_sac_forward(state, packed)
    jax.block_until_ready(action)

    action_ref = actor_sac_forward_ref(state, params)
    assert action.shape == (batch, action_dim)
    assert jnp.allclose(action.astype(jnp.float32),
                        action_ref.astype(jnp.float32),
                        atol=2e-3, rtol=2e-2), "mismatch vs reference"

    # TODO(synk): DenseNet (if_use_dn=True) branch and the stochastic heads
    # (get_action / get_action_logprob with torch.normal sampling) are not part of
    # ActorSAC.forward() and are not implemented here.
    print("KERNEL_OK")
</pallas_src>

<mosaic_0001>
module attributes {stable_mosaic.version = 11 : i64} {
  func.func @_actor_sac_kernel(%arg0: i32, %arg1: memref<16x128xbf16, #tpu.memory_space<vmem>>, %arg2: memref<128x128xbf16, #tpu.memory_space<vmem>>, %arg3: memref<128x128xbf16, #tpu.memory_space<vmem>>, %arg4: memref<128x128xbf16, #tpu.memory_space<vmem>>, %arg5: memref<128x128xbf16, #tpu.memory_space<vmem>>, %arg6: memref<1x128xf32, #tpu.memory_space<vmem>>, %arg7: memref<1x128xf32, #tpu.memory_space<vmem>>, %arg8: memref<1x128xf32, #tpu.memory_space<vmem>>, %arg9: memref<1x128xf32, #tpu.memory_space<vmem>>, %arg10: memref<16x128xbf16, #tpu.memory_space<vmem>>) attributes {dimension_semantics = [#tpu.dimension_semantics<parallel>], iteration_bounds = array<i64: 1>, scalar_prefetch = 0 : i64, scratch_operands = 0 : i64, tpu.core_type = #tpu.core_type<tc>, window_params = [{transform_indices = @transform_0, window_bounds = array<i64: 16, 128>}, {pipeline_mode = #tpu.pipeline_mode<synchronous>, transform_indices = @transform_1, window_bounds = array<i64: 128, 128>}, {pipeline_mode = #tpu.pipeline_mode<synchronous>, transform_indices = @transform_2, window_bounds = array<i64: 128, 128>}, {pipeline_mode = #tpu.pipeline_mode<synchronous>, transform_indices = @transform_3, window_bounds = array<i64: 128, 128>}, {pipeline_mode = #tpu.pipeline_mode<synchronous>, transform_indices = @transform_4, window_bounds = array<i64: 128, 128>}, {pipeline_mode = #tpu.pipeline_mode<synchronous>, transform_indices = @transform_5, window_bounds = array<i64: 1, 128>}, {pipeline_mode = #tpu.pipeline_mode<synchronous>, transform_indices = @transform_6, window_bounds = array<i64: 1, 128>}, {pipeline_mode = #tpu.pipeline_mode<synchronous>, transform_indices = @transform_7, window_bounds = array<i64: 1, 128>}, {pipeline_mode = #tpu.pipeline_mode<synchronous>, transform_indices = @transform_8, window_bounds = array<i64: 1, 128>}, {transform_indices = @transform_9, window_bounds = array<i64: 16, 128>}]} {
    %c0 = arith.constant 0 : index
    %c0_0 = arith.constant 0 : index
    %0 = vector.load %arg1[%c0, %c0_0] : memref<16x128xbf16, #tpu.memory_space<vmem>>, vector<16x128xbf16>
    %c0_1 = arith.constant 0 : index
    %c0_2 = arith.constant 0 : index
    %1 = vector.load %arg2[%c0_1, %c0_2] : memref<128x128xbf16, #tpu.memory_space<vmem>>, vector<128x128xbf16>
    %cst = arith.constant dense<0.000000e+00> : vector<16x128xf32>
    %2 = tpu.matmul %0, %1, %cst {dimension_numbers = #tpu.dot_dimension_numbers<[1], [0], [0], [1], [0, 0, 1, 1], [], []>} : vector<16x128xbf16>, vector<128x128xbf16>, vector<16x128xf32> -> vector<16x128xf32>
    %c0_3 = arith.constant 0 : index
    %c0_4 = arith.constant 0 : index
    %3 = vector.load %arg6[%c0_3, %c0_4] : memref<1x128xf32, #tpu.memory_space<vmem>>, vector<1x128xf32>
    %4 = vector.broadcast %3 : vector<1x128xf32> to vector<16x128xf32>
    %5 = arith.addf %2, %4 : vector<16x128xf32>
    %cst_5 = arith.constant 0.000000e+00 : f32
    %6 = vector.broadcast %cst_5 : f32 to vector<16x128xf32>
    %7 = arith.maximumf %5, %6 : vector<16x128xf32>
    %8 = arith.truncf %7 : vector<16x128xf32> to vector<16x128xbf16>
    %c0_6 = arith.constant 0 : index
    %c0_7 = arith.constant 0 : index
    %9 = vector.load %arg3[%c0_6, %c0_7] : memref<128x128xbf16, #tpu.memory_space<vmem>>, vector<128x128xbf16>
    %cst_8 = arith.constant dense<0.000000e+00> : vector<16x128xf32>
    %10 = tpu.matmul %8, %9, %cst_8 {dimension_numbers = #tpu.dot_dimension_numbers<[1], [0], [0], [1], [0, 0, 1, 1], [], []>} : vector<16x128xbf16>, vector<128x128xbf16>, vector<16x128xf32> -> vector<16x128xf32>
    %c0_9 = arith.constant 0 : index
    %c0_10 = arith.constant 0 : index
    %11 = vector.load %arg7[%c0_9, %c0_10] : memref<1x128xf32, #tpu.memory_space<vmem>>, vector<1x128xf32>
    %12 = vector.broadcast %11 : vector<1x128xf32> to vector<16x128xf32>
    %13 = arith.addf %10, %12 : vector<16x128xf32>
    %cst_11 = arith.constant 3.000000e+00 : f32
    %14 = vector.broadcast %cst_11 : f32 to vector<16x128xf32>
    %15 = arith.addf %13, %14 : vector<16x128xf32>
    %cst_12 = arith.constant 0.000000e+00 : f32
    %cst_13 = arith.constant 6.000000e+00 : f32
    %16 = vector.broadcast %cst_12 : f32 to vector<16x128xf32>
    %17 = arith.maximumf %16, %15 : vector<16x128xf32>
    %18 = vector.broadcast %cst_13 : f32 to vector<16x128xf32>
    %19 = arith.minimumf %18, %17 : vector<16x128xf32>
    %20 = arith.mulf %13, %19 : vector<16x128xf32>
    %cst_14 = arith.constant 0.166666672 : f32
    %21 = vector.broadcast %cst_14 : f32 to vector<16x128xf32>
    %22 = arith.mulf %20, %21 : vector<16x128xf32>
    %23 = arith.truncf %22 : vector<16x128xf32> to vector<16x128xbf16>
    %c0_15 = arith.constant 0 : index
    %c0_16 = arith.constant 0 : index
    %24 = vector.load %arg4[%c0_15, %c0_16] : memref<128x128xbf16, #tpu.memory_space<vmem>>, vector<128x128xbf16>
    %cst_17 = arith.constant dense<0.000000e+00> : vector<16x128xf32>
    %25 = tpu.matmul %23, %24, %cst_17 {dimension_numbers = #tpu.dot_dimension_numbers<[1], [0], [0], [1], [0, 0, 1, 1], [], []>} : vector<16x128xbf16>, vector<128x128xbf16>, vector<16x128xf32> -> vector<16x128xf32>
    %c0_18 = arith.constant 0 : index
    %c0_19 = arith.constant 0 : index
    %26 = vector.load %arg8[%c0_18, %c0_19] : memref<1x128xf32, #tpu.memory_space<vmem>>, vector<1x128xf32>
    %27 = vector.broadcast %26 : vector<1x128xf32> to vector<16x128xf32>
    %28 = arith.addf %25, %27 : vector<16x128xf32>
    %cst_20 = arith.constant 3.000000e+00 : f32
    %29 = vector.broadcast %cst_20 : f32 to vector<16x128xf32>
    %30 = arith.addf %28, %29 : vector<16x128xf32>
    %cst_21 = arith.constant 0.000000e+00 : f32
    %cst_22 = arith.constant 6.000000e+00 : f32
    %31 = vector.broadcast %cst_21 : f32 to vector<16x128xf32>
    %32 = arith.maximumf %31, %30 : vector<16x128xf32>
    %33 = vector.broadcast %cst_22 : f32 to vector<16x128xf32>
    %34 = arith.minimumf %33, %32 : vector<16x128xf32>
    %35 = arith.mulf %28, %34 : vector<16x128xf32>
    %cst_23 = arith.constant 0.166666672 : f32
    %36 = vector.broadcast %cst_23 : f32 to vector<16x128xf32>
    %37 = arith.mulf %35, %36 : vector<16x128xf32>
    %38 = arith.truncf %37 : vector<16x128xf32> to vector<16x128xbf16>
    %c0_24 = arith.constant 0 : index
    %c0_25 = arith.constant 0 : index
    %39 = vector.load %arg5[%c0_24, %c0_25] : memref<128x128xbf16, #tpu.memory_space<vmem>>, vector<128x128xbf16>
    %cst_26 = arith.constant dense<0.000000e+00> : vector<16x128xf32>
    %40 = tpu.matmul %38, %39, %cst_26 {dimension_numbers = #tpu.dot_dimension_numbers<[1], [0], [0], [1], [0, 0, 1, 1], [], []>} : vector<16x128xbf16>, vector<128x128xbf16>, vector<16x128xf32> -> vector<16x128xf32>
    %c0_27 = arith.constant 0 : index
    %c0_28 = arith.constant 0 : index
    %41 = vector.load %arg9[%c0_27, %c0_28] : memref<1x128xf32, #tpu.memory_space<vmem>>, vector<1x128xf32>
    %42 = vector.broadcast %41 : vector<1x128xf32> to vector<16x128xf32>
    %43 = arith.addf %40, %42 : vector<16x128xf32>
    %44 = math.tanh %43 : vector<16x128xf32>
    %45 = arith.truncf %44 : vector<16x128xf32> to vector<16x128xbf16>
    %c0_29 = arith.constant 0 : index
    %c0_30 = arith.constant 0 : index
    %46 = vector.load %arg10[%c0_29, %c0_30] : memref<16x128xbf16, #tpu.memory_space<vmem>>, vector<16x128xbf16>
    tpu.vector_store %arg10[%c0_29, %c0_30], %45 {strides = array<i32>} : memref<16x128xbf16, #tpu.memory_space<vmem>>, vector<16x128xbf16>,
    return
  }
  func.func @transform_0(%arg0: i32) -> (i32, i32) {
    %c0_i32 = arith.constant 0 : i32
    %c0_i32_0 = arith.constant 0 : i32
    return %arg0, %c0_i32 : i32, i32
  }
  func.func @transform_1(%arg0: i32) -> (i32, i32) {
    %c0_i32 = arith.constant 0 : i32
    %c0_i32_0 = arith.constant 0 : i32
    %c0_i32_1 = arith.constant 0 : i32
    return %c0_i32, %c0_i32_0 : i32, i32
  }
  func.func @transform_2(%arg0: i32) -> (i32, i32) {
    %c0_i32 = arith.constant 0 : i32
    %c0_i32_0 = arith.constant 0 : i32
    %c0_i32_1 = arith.constant 0 : i32
    return %c0_i32, %c0_i32_0 : i32, i32
  }
  func.func @transform_3(%arg0: i32) -> (i32, i32) {
    %c0_i32 = arith.constant 0 : i32
    %c0_i32_0 = arith.constant 0 : i32
    %c0_i32_1 = arith.constant 0 : i32
    return %c0_i32, %c0_i32_0 : i32, i32
  }
  func.func @transform_4(%arg0: i32) -> (i32, i32) {
    %c0_i32 = arith.constant 0 : i32
    %c0_i32_0 = arith.constant 0 : i32
    %c0_i32_1 = arith.constant 0 : i32
    return %c0_i32, %c0_i32_0 : i32, i32
  }
  func.func @transform_5(%arg0: i32) -> (i32, i32) {
    %c0_i32 = arith.constant 0 : i32
    %c0_i32_0 = arith.constant 0 : i32
    %c0_i32_1 = arith.constant 0 : i32
    return %c0_i32, %c0_i32_0 : i32, i32
  }
  func.func @transform_6(%arg0: i32) -> (i32, i32) {
    %c0_i32 = arith.constant 0 : i32
    %c0_i32_0 = arith.constant 0 : i32
    %c0_i32_1 = arith.constant 0 : i32
    return %c0_i32, %c0_i32_0 : i32, i32
  }
  func.func @transform_7(%arg0: i32) -> (i32, i32) {
    %c0_i32 = arith.constant 0 : i32
    %c0_i32_0 = arith.constant 0 : i32
    %c0_i32_1 = arith.constant 0 : i32
    return %c0_i32, %c0_i32_0 : i32, i32
  }
  func.func @transform_8(%arg0: i32) -> (i32, i32) {
    %c0_i32 = arith.constant 0 : i32
    %c0_i32_0 = arith.constant 0 : i32
    %c0_i32_1 = arith.constant 0 : i32
    return %c0_i32, %c0_i32_0 : i32, i32
  }
  func.func @transform_9(%arg0: i32) -> (i32, i32) {
    %c0_i32 = arith.constant 0 : i32
    %c0_i32_0 = arith.constant 0 : i32
    return %arg0, %c0_i32 : i32, i32
  }
}

</mosaic_0001>

<bundles_post_ra>
// kernel: tpu_custom_call.1
= control target key start
LH: loop header
LB: loop body
LE: loop exit
PB: predicated region body
PF: predicated region fallthrough
CT: control target
= control target key end

     0   :  { %14 = vsyncpa [#allocation3], 0  ;;  %s1179_s0 = inlined_call_operand.hbm [shape: bf16[16,128], index: 0, kind: input, shape index: {}]   ;;  %s1180_s1 = inlined_call_operand.hbm [shape: bf16[128,128], index: 1, kind: input, shape index: {}]   ;;  %s1181_s2 = inlined_call_operand.hbm [shape: bf16[128,128], index: 2, kind: input, shape index: {}]   ;;  %s1182_s3 = inlined_call_operand.hbm [shape: bf16[128,128], index: 3, kind: input, shape index: {}]   ;;  %s1183_s4 = inlined_call_operand.hbm [shape: bf16[128,128], index: 4, kind: input, shape index: {}]   ;;  %s1184_s5 = inlined_call_operand.vmem [shape: f32[1,128], index: 5, kind: input, shape index: {}]   ;;  %s1185_s6 = inlined_call_operand.vmem [shape: f32[1,128], index: 6, kind: input, shape index: {}]   ;;  %s1186_s7 = inlined_call_operand.vmem [shape: f32[1,128], index: 7, kind: input, shape index: {}]   ;;  %s1187_s8 = inlined_call_operand.vmem [shape: f32[1,128], index: 8, kind: input, shape index: {}]   ;;  %s1188_s9 = inlined_call_operand.hbm [shape: bf16[16,128], index: 9, kind: output, shape index: {}]  }
   0x1   :  { %15 = vsyncpa [#allocation6], 0 }
   0x2   :  { %16 = vsyncpa [#allocation9], 0 }
   0x3   :  { %17 = vsyncpa [#allocation4], 0  ;;  %s963_s30 = smov [#allocation5]   ;;  %s964_s11 = smov [#allocation8]  }
   0x4   :  { %s35_s10 = sshll.u32 %s963_s30, 4  ;;  %s59_s12 = sshll.u32 %s964_s11, 4  ;;  %s36_s10 = int_to_ptr.vmem [resolvable:$true] %s35_s10  ;;  %s1023_s12 = int_to_ptr.vmem [resolvable:$true] %s59_s12 }
   0x5   :  { %s823_s15 = scalar_lea.hbm %s1180_s1, 1024 }
   0x6   :  { %p824_p0 = scmp.ne.s32.totalorder %s1180_s1, %s823_s15  ;;  %p827_p1 = scmp.lt.u32.totalorder %s823_s15, %s1180_s1 }
   0x8   :  { %p829_p2 = pnand %p827_p1, %p824_p0 }
   0xa   :  { %832 = shalt.err (!%p829_p2)
}
   0xb   :  { %s833_s20 = scalar_lea.vmem %s36_s10, 1024  ;;  %p838_p4 = scmp.lt.s32.totalorder %s36_s10, %s36_s10 }
   0xc   :  { %p834_p3 = scmp.ne.s32.totalorder %s36_s10, %s833_s20  ;;  %p839_p5 = scmp.lt.s32.totalorder %s833_s20, %s833_s20 }
   0xe   :  { %p840_p6 = por %p839_p5, %p838_p4 }
  0x10   :  { %p841_p7 = pnand %p840_p6, %p834_p3 }
  0x12   :  { %844 = shalt.err (!%p841_p7)
}
  0x13   :  { %s965_s21 = smov 64   ;;  %s966_s22 = smov 4  }
  0x14   :  { %41 = dma.hbm_to_vmem [thread:$0]  %s1180_s1, 1024, %s36_s10, [#allocation6], %s965_s21, %s965_s21, %s966_s22  }
  0x15   :  { %s845_s27 = scalar_lea.hbm %s1182_s3, 1024 }
  0x16   :  { %p846_p8 = scmp.ne.s32.totalorder %s1182_s3, %s845_s27  ;;  %p849_p9 = scmp.lt.u32.totalorder %s845_s27, %s1182_s3 }
  0x18   :  { %p851_p10 = pnand %p849_p9, %p846_p8 }
  0x1a   :  { %854 = shalt.err (!%p851_p10)
}
  0x1b   :  { %s855_s13 = scalar_lea.vmem %s1023_s12, 1024  ;;  %p860_p12 = scmp.lt.s32.totalorder %s1023_s12, %s1023_s12 }
  0x1c   :  { %p856_p11 = scmp.ne.s32.totalorder %s1023_s12, %s855_s13  ;;  %p861_p13 = scmp.lt.s32.totalorder %s855_s13, %s855_s13 }
  0x1e   :  { %p862_p0 = por %p861_p13, %p860_p12 }
  0x20   :  { %p863_p1 = pnand %p862_p0, %p856_p11 }
  0x22   :  { %866 = shalt.err (!%p863_p1)
}
  0x23   :  { %65 = dma.hbm_to_vmem [thread:$0]  %s1182_s3, 1024, %s1023_s12, [#allocation9], %s965_s21, %s965_s21, %s966_s22  }
  0x24   :  { %s967_s14 = smov [#allocation2]   ;;  %s968_s16 = smov [#allocation7]  }
  0x25   :  { %s23_s15 = sshll.u32 %s967_s14, 4  ;;  %s47_s17 = sshll.u32 %s968_s16, 4  ;;  %s24_s15 = int_to_ptr.vmem [resolvable:$true] %s23_s15  ;;  %s1060_s17 = int_to_ptr.vmem [resolvable:$true] %s47_s17 }
  0x26   :  { %s867_s20 = scalar_lea.hbm %s1179_s0, 128 }
  0x27   :  { %p868_p2 = scmp.ne.s32.totalorder %s1179_s0, %s867_s20  ;;  %p871_p3 = scmp.lt.u32.totalorder %s867_s20, %s1179_s0 }
  0x29   :  { %p873_p4 = pnand %p871_p3, %p868_p2 }
  0x2b   :  { %876 = shalt.err (!%p873_p4)
}
  0x2c   :  { %s877_s3 = scalar_lea.vmem %s24_s15, 128  ;;  %p882_p6 = scmp.lt.s32.totalorder %s24_s15, %s24_s15 }
  0x2d   :  { %p878_p5 = scmp.ne.s32.totalorder %s24_s15, %s877_s3  ;;  %p883_p7 = scmp.lt.s32.totalorder %s877_s3, %s877_s3 }
  0x2f   :  { %p884_p8 = por %p883_p7, %p882_p6 }
  0x31   :  { %p885_p9 = pnand %p884_p8, %p878_p5 }
  0x33   :  { %888 = shalt.err (!%p885_p9)
}
  0x34   :  { %29 = dma.hbm_to_vmem [thread:$0]  %s1179_s0, 128, %s24_s15, [#allocation3], %s965_s21, %s965_s21, %s966_s22  }
  0x35   :  { %s889_s30 = scalar_lea.hbm %s1181_s2, 1024 }
  0x36   :  { %p890_p10 = scmp.ne.s32.totalorder %s1181_s2, %s889_s30  ;;  %p893_p11 = scmp.lt.u32.totalorder %s889_s30, %s1181_s2 }
  0x38   :  { %p895_p12 = pnand %p893_p11, %p890_p10 }
  0x3a   :  { %898 = shalt.err (!%p895_p12)
}
  0x3b   :  { %s899_s14 = scalar_lea.vmem %s1060_s17, 1024  ;;  %p904_p0 = scmp.lt.s32.totalorder %s1060_s17, %s1060_s17 }
  0x3c   :  { %p900_p13 = scmp.ne.s32.totalorder %s1060_s17, %s899_s14  ;;  %p905_p1 = scmp.lt.s32.totalorder %s899_s14, %s899_s14 }
  0x3e   :  { %p906_p2 = por %p905_p1, %p904_p0 }
  0x40   :  { %p907_p3 = pnand %p906_p2, %p900_p13 }
  0x42   :  { %910 = shalt.err (!%p907_p3)
}
  0x43   :  { %53 = dma.hbm_to_vmem [thread:$0]  %s1181_s2, 1024, %s1060_s17, [#allocation6], %s965_s21, %s965_s21, %s966_s22  }
  0x44   :  { %s969_s16 = smov [#allocation10]   ;;  %s911_s23 = scalar_lea.hbm %s1183_s4, 1024 }
  0x45   :  { %s71_s18 = sshll.u32 %s969_s16, 4  ;;  %p912_p4 = scmp.ne.s32.totalorder %s1183_s4, %s911_s23  ;;  %s72_s18 = int_to_ptr.vmem [resolvable:$true] %s71_s18 }
  0x46   :  { %p915_p5 = scmp.lt.u32.totalorder %s911_s23, %s1183_s4 }
  0x48   :  { %p917_p6 = pnand %p915_p5, %p912_p4 }
  0x4a   :  { %920 = shalt.err (!%p917_p6)
}
  0x4b   :  { %s921_s12 = scalar_lea.vmem %s72_s18, 1024  ;;  %p926_p8 = scmp.lt.s32.totalorder %s72_s18, %s72_s18 }
  0x4c   :  { %p922_p7 = scmp.ne.s32.totalorder %s72_s18, %s921_s12  ;;  %p927_p9 = scmp.lt.s32.totalorder %s921_s12, %s921_s12 }
  0x4e   :  { %p928_p10 = por %p927_p9, %p926_p8 }
  0x50   :  { %p929_p11 = pnand %p928_p10, %p922_p7 }
  0x52   :  { %932 = shalt.err (!%p929_p11)
}
  0x53   :  { %77 = dma.hbm_to_vmem [thread:$0]  %s1183_s4, 1024, %s72_s18, [#allocation9], %s965_s21, %s965_s21, %s966_s22  }
  0x54   :  { %955 = dma.done.wait [#allocation3], 128  }
  0x55   :  { %956 = vsyncadd [#allocation3], 4294967168 }
  0x56   :  { %957 = dma.done.wait [#allocation6], 2048  }
  0x57   :  { %958 = vsyncadd [#allocation6], 4294965248 }
  0x58   :  { %959 = dma.done.wait [#allocation9], 2048  }
  0x59   :  { %960 = vsyncadd [#allocation9], 4294965248  ;;  %v970_v0 = vmov 0.0   ;;  %vm971_vm0 = vmmov 0   ;;  %v786_v1 = vld [vmem:[#allocation5] sm:$0xff]   ;;  %v787_v2 = vld [vmem:[#allocation5 + $0x8] sm:$0xff]  }
  0x5a   :  { %696 = vmatprep.subr.bf16.mxu0 %v970_v0  ;;  %712 = vmatprep.mubr.msk.bf16.mxu0 %vm971_vm0, %v970_v0  ;;  %v788_v3 = vld [vmem:[#allocation5 + $0x10] sm:$0xff]   ;;  %v795_v4 = vld [vmem:[#allocation7] sm:$0xff]   ;;  %v789_v5 = vld [vmem:[#allocation5 + $0x18] sm:$0xff]   ;;  %s972_s11 = smov [#allocation11]  }
  0x5b   :  { %716 = vmatprep.subr.bf16.mxu1 %v970_v0  ;;  %732 = vmatprep.mubr.msk.bf16.mxu1 %vm971_vm0, %v970_v0  ;;  %v796_v6 = vld [vmem:[#allocation7 + $0x8] sm:$0xff]   ;;  %v790_v7 = vld [vmem:[#allocation5 + $0x20] sm:$0xff]   ;;  %v797_v8 = vld [vmem:[#allocation7 + $0x10] sm:$0xff]   ;;  %s600_s13 = sshll.u32 %s972_s11, 4  ;;  %s601_s13 = int_to_ptr.vmem [resolvable:$true] %s600_s13 }
  0x5c   :  { %697 = vmatpush3.bf16.msra.mxu0 %v786_v1  ;;  %717 = vmatpush3.bf16.msra.mxu1 %v795_v4  ;;  %v791_v9 = vld [vmem:[#allocation5 + $0x28] sm:$0xff]   ;;  %v798_v10 = vld [vmem:[#allocation7 + $0x18] sm:$0xff]   ;;  %v792_v11 = vld [vmem:[#allocation5 + $0x30] sm:$0xff]   ;;  %s933_s1 = scalar_lea.vmem %s601_s13, 128  ;;  %p938_p13 = scmp.lt.s32.totalorder %s601_s13, %s601_s13 }
  0x5d   :  { %698 = vmatprep.subr.bf16.mxu0 %v970_v0  ;;  %718 = vmatprep.subr.bf16.mxu1 %v970_v0  ;;  %v799_v12 = vld [vmem:[#allocation7 + $0x20] sm:$0xff]   ;;  %v793_v13 = vld [vmem:[#allocation5 + $0x38] sm:$0xff]   ;;  %v800_v14 = vld [vmem:[#allocation7 + $0x28] sm:$0xff]   ;;  %p934_p12 = scmp.ne.s32.totalorder %s601_s13, %s933_s1  ;;  %p939_p0 = scmp.lt.s32.totalorder %s933_s1, %s933_s1 }
  0x5e   :  { %v794_v15 = vld [vmem:[#allocation2] sm:$0xff]   ;;  %v801_v16 = vld [vmem:[#allocation7 + $0x30] sm:$0xff]   ;;  %v803_v18 = vld [vmem:[#allocation8] sm:$0xff]  }
  0x5f   :  { %v802_v17 = vld [vmem:[#allocation7 + $0x38] sm:$0xff]   ;;  %v804_v19 = vld [vmem:[#allocation8 + $0x8] sm:$0xff]   ;;  %v805_v20 = vld [vmem:[#allocation8 + $0x10] sm:$0xff]   ;;  %p940_p1 = por %p939_p0, %p938_p13 }
  0x60   :  { %699 = vmatpush3.bf16.msra.mxu0 %v787_v2  ;;  %719 = vmatpush3.bf16.msra.mxu1 %v796_v6  ;;  %v806_v21 = vld [vmem:[#allocation8 + $0x18] sm:$0xff]   ;;  %v807_v32 = vld [vmem:[#allocation8 + $0x20] sm:$0xff]   ;;  %v808_v33 = vld [vmem:[#allocation8 + $0x28] sm:$0xff]  }
  0x61   :  { %700 = vmatprep.subr.bf16.mxu0 %v970_v0  ;;  %720 = vmatprep.subr.bf16.mxu1 %v970_v0  ;;  %v614_v22 = vld [vmem:[%s1184_s5] ss:$0 sm:$0xff]  ;;  %v809_v34 = vld [vmem:[#allocation8 + $0x30] sm:$0xff]   ;;  %v811_v36 = vld [vmem:[#allocation10] sm:$0xff]   ;;  %p941_p2 = pnand %p940_p1, %p934_p12 }
  0x62   :  { %v810_v35 = vld [vmem:[#allocation8 + $0x38] sm:$0xff]   ;;  %v812_v37 = vld [vmem:[#allocation10 + $0x8] sm:$0xff]   ;;  %v813_v38 = vld [vmem:[#allocation10 + $0x10] sm:$0xff]  }
  0x63   :  { %v814_v39 = vld [vmem:[#allocation10 + $0x18] sm:$0xff]   ;;  %v815_v58 = vld [vmem:[#allocation10 + $0x20] sm:$0xff]   ;;  %v816_v59 = vld [vmem:[#allocation10 + $0x28] sm:$0xff]  }
  0x64   :  { %701 = vmatpush3.bf16.msra.mxu0 %v788_v3  ;;  %721 = vmatpush3.bf16.msra.mxu1 %v797_v8  ;;  %v624_v40 = vld [vmem:[%s1185_s6] ss:$0 sm:$0xff]  ;;  %v817_v60 = vld [vmem:[#allocation10 + $0x30] sm:$0xff]  }
  0x65   :  { %702 = vmatprep.subr.bf16.mxu0 %v970_v0  ;;  %722 = vmatprep.subr.bf16.mxu1 %v970_v0  ;;  %v818_v61 = vld [vmem:[#allocation10 + $0x38] sm:$0xff]  }
  0x66   :  { %v633_v62 = vld [vmem:[%s1186_s7] ss:$0 sm:$0xff] }
  0x68   :  { %703 = vmatpush3.bf16.msra.mxu0 %v789_v5  ;;  %723 = vmatpush3.bf16.msra.mxu1 %v798_v10 }
  0x69   :  { %704 = vmatprep.subr.bf16.mxu0 %v970_v0  ;;  %724 = vmatprep.subr.bf16.mxu1 %v970_v0 }
  0x6c   :  { %705 = vmatpush3.bf16.msra.mxu0 %v790_v7  ;;  %725 = vmatpush3.bf16.msra.mxu1 %v799_v12 }
  0x6d   :  { %706 = vmatprep.subr.bf16.mxu0 %v970_v0  ;;  %726 = vmatprep.subr.bf16.mxu1 %v970_v0 }
  0x70   :  { %707 = vmatpush3.bf16.msra.mxu0 %v791_v9  ;;  %727 = vmatpush3.bf16.msra.mxu1 %v800_v14 }
  0x71   :  { %708 = vmatprep.subr.bf16.mxu0 %v970_v0  ;;  %728 = vmatprep.subr.bf16.mxu1 %v970_v0 }
  0x74   :  { %709 = vmatpush3.bf16.msra.mxu0 %v792_v11  ;;  %729 = vmatpush3.bf16.msra.mxu1 %v801_v16  ;;  %v642_v16 = vld [vmem:[%s1187_s8] ss:$0 sm:$0xff] }
  0x75   :  { %710 = vmatprep.subr.bf16.mxu0 %v970_v0  ;;  %730 = vmatprep.subr.bf16.mxu1 %v970_v0 }
  0x78   :  { %711 = vmatpush3.bf16.msra.mxu0 %v793_v13  ;;  %731 = vmatpush3.bf16.msra.mxu1 %v802_v17 }
  0x79   :  { %736 = vmatprep.subr.bf16.mxu0 %v970_v0  ;;  %756 = vmatprep.subr.bf16.mxu1 %v970_v0 }
  0x7b   :  { %713 = vmatmul.mubr.bf16.vlgmr.msra.gmra.mrb[0].mxu0 %v794_v15 }
  0x7c   :  { %752 = vmatprep.mubr.msk.bf16.mxu0 %vm971_vm0, %v970_v0  ;;  %737 = vmatpush3.bf16.msra.mxu0 %v803_v18 }
  0x7d   :  { %738 = vmatprep.subr.bf16.mxu0 %v970_v0 }
  0x80   :  { %739 = vmatpush3.bf16.msra.mxu0 %v804_v19 }
  0x81   :  { %740 = vmatprep.subr.bf16.mxu0 %v970_v0 }
  0x84   :  { %741 = vmatpush3.bf16.msra.mxu0 %v805_v20 }
  0x85   :  { %742 = vmatprep.subr.bf16.mxu0 %v970_v0 }
  0x88   :  { %743 = vmatpush3.bf16.msra.mxu0 %v806_v21 }
  0x89   :  { %744 = vmatprep.subr.bf16.mxu0 %v970_v0 }
  0x8c   :  { %745 = vmatpush3.bf16.msra.mxu0 %v807_v32 }
  0x8d   :  { %746 = vmatprep.subr.bf16.mxu0 %v970_v0 }
  0x90   :  { %747 = vmatpush3.bf16.msra.mxu0 %v808_v33 }
  0x91   :  { %748 = vmatprep.subr.bf16.mxu0 %v970_v0 }
  0x94   :  { %749 = vmatpush3.bf16.msra.mxu0 %v809_v34 }
  0x95   :  { %750 = vmatprep.subr.bf16.mxu0 %v970_v0 }
  0x98   :  { %751 = vmatpush3.bf16.msra.mxu0 %v810_v35 }
 0x14e   :  { %v215_v23 = vpop.f32.mrb[0].mxu0 }
 0x14f   :  { %v216_v24 = vadd.f32 %v614_v22, %v215_v23  ;;  %v714_v25 = vpop.f32.mrb[1].mxu0 }
 0x150   :  { %v218_v26 = vpop.f32.mrb[2].mxu0 }
 0x151   :  { %v219_v27 = vadd.f32 %v614_v22, %v218_v26  ;;  %v715_v28 = vpop.f32.mrb[3].mxu0  ;;  %v222_v29 = vmax.f32 %v216_v24, 0.0 }
 0x153   :  { %v223_v30 = vmax.f32 %v219_v27, 0.0 }
 0x155   :  { %v224_v31 = vpack.c.bf16 %v223_v30, %v222_v29 }
 0x157   :  { %733 = vmatmul.mubr.bf16.vlgmr.msra.gmra.mrb[0].mxu1 %v224_v31 }
 0x158   :  { %772 = vmatprep.mubr.msk.bf16.mxu1 %vm971_vm0, %v970_v0  ;;  %757 = vmatpush3.bf16.msra.mxu1 %v811_v36 }
 0x159   :  { %758 = vmatprep.subr.bf16.mxu1 %v970_v0 }
 0x15c   :  { %759 = vmatpush3.bf16.msra.mxu1 %v812_v37 }
 0x15d   :  { %760 = vmatprep.subr.bf16.mxu1 %v970_v0 }
 0x160   :  { %761 = vmatpush3.bf16.msra.mxu1 %v813_v38 }
 0x161   :  { %762 = vmatprep.subr.bf16.mxu1 %v970_v0 }
 0x164   :  { %763 = vmatpush3.bf16.msra.mxu1 %v814_v39 }
 0x165   :  { %764 = vmatprep.subr.bf16.mxu1 %v970_v0 }
 0x168   :  { %765 = vmatpush3.bf16.msra.mxu1 %v815_v58 }
 0x169   :  { %766 = vmatprep.subr.bf16.mxu1 %v970_v0 }
 0x16c   :  { %767 = vmatpush3.bf16.msra.mxu1 %v816_v59 }
 0x16d   :  { %768 = vmatprep.subr.bf16.mxu1 %v970_v0 }
 0x170   :  { %769 = vmatpush3.bf16.msra.mxu1 %v817_v60 }
 0x171   :  { %770 = vmatprep.subr.bf16.mxu1 %v970_v0 }
 0x174   :  { %771 = vmatpush3.bf16.msra.mxu1 %v818_v61 }
 0x22a   :  { %v330_v41 = vpop.f32.mrb[0].mxu1 }
 0x22b   :  { %v331_v42 = vadd.f32 %v624_v40, %v330_v41  ;;  %v734_v43 = vpop.f32.mrb[1].mxu1 }
 0x22c   :  { %v333_v44 = vpop.f32.mrb[2].mxu1 }
 0x22d   :  { %v337_v45 = vadd.f32 3.0, %v331_v42  ;;  %v334_v46 = vadd.f32 %v624_v40, %v333_v44  ;;  %v735_v47 = vpop.f32.mrb[3].mxu1 }
 0x22f   :  { %v339_v48 = vmax.f32 %v337_v45, 0.0  ;;  %v338_v49 = vadd.f32 3.0, %v334_v46 }
 0x231   :  { %v341_v50 = vmin.f32 %v339_v48, 6.0  ;;  %v340_v51 = vmax.f32 %v338_v49, 0.0 }
 0x233   :  { %v343_v52 = vmul.f32 %v341_v50, %v331_v42  ;;  %v342_v53 = vmin.f32 %v340_v51, 6.0 }
 0x235   :  { %v344_v54 = vmul.f32 %v342_v53, %v334_v46  ;;  %v345_v55 = vmul.f32 0.16666667, %v343_v52 }
 0x237   :  { %v346_v56 = vmul.f32 0.16666667, %v344_v54 }
 0x239   :  { %v347_v57 = vpack.c.bf16 %v346_v56, %v345_v55 }
 0x23b   :  { %753 = vmatmul.mubr.bf16.vlgmr.msra.gmra.mrb[4].mxu0 %v347_v57 }
 0x30e   :  { %v453_v63 = vpop.f32.mrb[4].mxu0 }
 0x30f   :  { %v454_v1 = vadd.f32 %v633_v62, %v453_v63  ;;  %v754_v2 = vpop.f32.mrb[5].mxu0 }
 0x310   :  { %v456_v3 = vpop.f32.mrb[6].mxu0 }
 0x311   :  { %v460_v4 = vadd.f32 3.0, %v454_v1  ;;  %v457_v5 = vadd.f32 %v633_v62, %v456_v3  ;;  %v755_v6 = vpop.f32.mrb[7].mxu0 }
 0x313   :  { %v462_v7 = vmax.f32 %v460_v4, 0.0  ;;  %v461_v8 = vadd.f32 3.0, %v457_v5 }
 0x315   :  { %v464_v9 = vmin.f32 %v462_v7, 6.0  ;;  %v463_v10 = vmax.f32 %v461_v8, 0.0 }
 0x317   :  { %v466_v11 = vmul.f32 %v464_v9, %v454_v1  ;;  %v465_v12 = vmin.f32 %v463_v10, 6.0 }
 0x319   :  { %v467_v0 = vmul.f32 %v465_v12, %v457_v5  ;;  %v468_v13 = vmul.f32 0.16666667, %v466_v11 }
 0x31b   :  { %v469_v14 = vmul.f32 0.16666667, %v467_v0 }
 0x31d   :  { %v470_v15 = vpack.c.bf16 %v469_v14, %v468_v13 }
 0x31f   :  { %773 = vmatmul.mubr.bf16.vlgmr.msra.gmra.mrb[4].mxu1 %v470_v15 }
 0x3f2   :  { %v576_v17 = vpop.f32.mrb[4].mxu1 }
 0x3f3   :  { %v577_v18 = vadd.f32 %v642_v16, %v576_v17  ;;  %v774_v19 = vpop.f32.mrb[5].mxu1 }
 0x3f4   :  { %v579_v20 = vpop.f32.mrb[6].mxu1 }
 0x3f5   :  { %v580_v21 = vadd.f32 %v642_v16, %v579_v20  ;;  %v775_v22 = vpop.f32.mrb[7].mxu1  ;;  %819 = vtanh.f32 %v577_v18 }
 0x3f7   :  { %821 = vtanh.f32 %v580_v21 }
 0x3ff   :  { %v820_v23 = vpop.eup %819 }
 0x401   :  { %v822_v24 = vpop.eup %821 }
 0x402   :  { %v658_v25 = vpack.c.bf16 %v822_v24, %v820_v23 }
 0x404   :  { %659 = vst [vmem:[#allocation11] sm:$0xff] %v658_v25  }
 0x405   :  { %944 = shalt.err (!%p941_p2)
}
 0x406   :  { %s945_s14 = scalar_lea.hbm %s1188_s9, 128 }
 0x407   :  { %p946_p3 = scmp.ne.s32.totalorder %s1188_s9, %s945_s14  ;;  %p949_p4 = scmp.lt.u32.totalorder %s945_s14, %s1188_s9 }
 0x409   :  { %p951_p5 = pnand %p949_p4, %p946_p3 }
 0x40b   :  { %954 = shalt.err (!%p951_p5)
}
 0x40c   :  { %606 = dma.vmem_to_hbm [thread:$0]  %s601_s13, 128, %s1188_s9, [#allocation4], %s965_s21, %s965_s21, %s966_s22  }
 0x40d   :  { %961 = dma.done.wait [#allocation4], 128  }
 0x40e   :  { %962 = vsyncadd [#allocation4], 4294967168 }
 0x40f   :  { %610 = vsyncpa [#allocation3], 1 }
 0x410   :  { %611 = vsyncpa [#allocation6], 1 }
 0x411   :  { %612 = vsyncpa [#allocation9], 1 }
 0x412   :  { %613 = vsyncpa [#allocation4], 1 }

</bundles_post_ra>
